<compile_context>
chip_gen: v5e
topology: v5e:2x2
jax: 0.10.0
libtpu: 0.0.40
codegen_flags: <defaults>
</compile_context>

<pallas_src>
import functools

import jax
import jax.numpy as jnp
import numpy as np
from jax.experimental import pallas as pl
from jax.experimental.pallas import tpu as pltpu

NUM_CLASSES = 21
PADDED_CLASSES = 32          # sublane padding (multiple of 8, NOT 128)
IN_CHANNELS = 256


def _round_up(v, m):
    return (v + m - 1) // m * m


def _ce_kernel(x_ref, w_ref, b_ref, y_ref, loss_ref, *, hw, tile, n_par, n_seq):
    """One grid step = one (IN_CHANNELS, tile) slab of pixels of one image.

    x_ref:    (IN_CHANNELS, tile) f32/bf16  pixel features (pixels on lanes)
    w_ref:    (PADDED_CLASSES, IN_CHANNELS) conv weight (rows >= 21 are zero)
    b_ref:    (PADDED_CLASSES, 1) f32       bias (padded classes hold -1e30)
    y_ref:    (1, tile) i32                 target class per pixel
    loss_ref: (1, tile) f32                 per-lane partial loss sums
    """
    j = pl.program_id(2)

    @pl.when(j == 0)
    def _():
        loss_ref[...] = jnp.zeros_like(loss_ref)

    x = x_ref[...]                                                    # (256, T)
    # 1x1 conv == per-pixel linear layer -> MXU matmul, classes on sublanes.
    logits = jnp.dot(w_ref[...], x,
                     preferred_element_type=jnp.float32) + b_ref[...]  # (32, T)

    # Numerically-stable softmax pieces over the class (sublane) axis.
    m = jnp.max(logits, axis=0, keepdims=True)                        # (1, T)
    shifted = logits - m                                               # (32, T)
    sumexp = jnp.sum(jnp.exp(shifted), axis=0, keepdims=True)          # (1, T)

    # Target logit via one-hot select on the shifted logits (no gather on TPU):
    #   loss = logsumexp - logit[y] = log(sum exp(shifted)) - shifted[y]
    y = y_ref[...]                                                     # (1, T)
    cls_ids = jax.lax.broadcasted_iota(jnp.int32, (PADDED_CLASSES, 1), 0)
    tgt = jnp.sum(jnp.where(cls_ids == y, shifted, 0.0),
                  axis=0, keepdims=True)                               # (1, T)

    per_pixel = jnp.log(sumexp) - tgt                                  # (1, T)

    if hw % tile != 0:
        # Only the LAST pixel tile has out-of-bounds (garbage) lanes; gate the
        # mask behind pl.when so every other tile pays nothing.
        n_valid_last = hw - (n_par * n_seq - 1) * tile
        is_last = (pl.program_id(1) == n_par - 1) & (j == n_seq - 1)

        @pl.when(is_last)
        def _():
            lane = jax.lax.broadcasted_iota(jnp.int32, per_pixel.shape, 1)
            loss_ref[...] += jnp.where(lane < n_valid_last, per_pixel, 0.0)

        @pl.when(jnp.logical_not(is_last))
        def _():
            loss_ref[...] += per_pixel
    else:
        loss_ref[...] += per_pixel


def _pick_tile_and_vmem(hw, tile_hw, x_bytes_per_elem):
    """Chip-aware pixel-tile size + explicit VMEM limit."""
    try:
        vmem_phys = int(pltpu.get_tpu_info().vmem_capacity_bytes)
    except Exception:
        vmem_phys = 64 << 20          # conservative: v7x has 64 MiB / core
    # Keep the double-buffered x stream under ~45% of physical VMEM.
    budget = int(vmem_phys * 0.45)
    max_t = (budget // (2 * IN_CHANNELS * x_bytes_per_elem)) // 128 * 128
    max_t = max(max_t, 128)
    t = max(min(tile_hw, _round_up(hw, 128), max_t), 128)
    t = t // 128 * 128
    # Explicit scoped limit: double-buffered x/y/out + weights + slack.  At
    # least 32 MiB (so v5e's 16 MiB default never bites), capped below v7x's
    # 64 MiB physical VMEM.
    need = (2 * IN_CHANNELS * t * x_bytes_per_elem
            + 4 * t * 4
            + 2 * PADDED_CLASSES * (IN_CHANNELS + 1) * 4)
    vmem_limit = int(min(max(need + (8 << 20), 32 << 20), 56 << 20))
    return t, vmem_limit


def conv1x1_cross_entropy_loss(x_nchw, y, weight, bias, *, tile_hw=8192,
                               cast_bf16=False):
    """x_nchw: (N,256,H,W) f32; y: (N,H,W) int; weight: (21,256,1,1); bias: (21,)."""
    n, c, h, w = x_nchw.shape
    assert c == IN_CHANNELS
    assert tile_hw % 128 == 0
    hw = h * w
    total_rows = n * hw

    # Free, contiguous reshapes only -- no HBM transpose of x.
    x_rows = x_nchw.reshape(n, c, hw)                        # (N, 256, HW)
    y_rows = y.reshape(n, 1, hw).astype(jnp.int32)           # (N, 1, HW)

    # Class-padded weight (zeros) and bias (-1e30 acts as the class mask).
    w_mat = weight.reshape(NUM_CLASSES, IN_CHANNELS).astype(jnp.float32)
    w_pad = jnp.zeros((PADDED_CLASSES, IN_CHANNELS),
                      jnp.float32).at[:NUM_CLASSES].set(w_mat)
    b_pad = jnp.full((PADDED_CLASSES, 1), -1e30, jnp.float32)
    b_pad = b_pad.at[:NUM_CLASSES, 0].set(bias.astype(jnp.float32))

    if cast_bf16:
        # Opt-in: halves HBM traffic of the dominant x stream; accumulation
        # stays f32 via preferred_element_type.  Perturbs numerics ~1e-3.
        x_rows = x_rows.astype(jnp.bfloat16)
        w_pad = w_pad.astype(jnp.bfloat16)

    x_bytes = x_rows.dtype.itemsize
    t, vmem_limit = _pick_tile_and_vmem(hw, tile_hw, x_bytes)

    total_tiles = pl.cdiv(hw, t)
    # v7x has two TensorCores: if the pixel-tile count splits evenly, expose a
    # second "parallel" grid axis so both cores get work even when N is small
    # or odd.  (No-op on single-core v5e/v6e; skipped for odd tile counts so
    # no block can start out of bounds.)
    if total_tiles % 2 == 0:
        n_par, n_seq = 2, total_tiles // 2
    else:
        n_par, n_seq = 1, total_tiles

    kernel = functools.partial(_ce_kernel, hw=hw, tile=t,
                               n_par=n_par, n_seq=n_seq)

    cost = pl.CostEstimate(
        flops=2 * PADDED_CLASSES * IN_CHANNELS * n * hw,
        transcendentals=(PADDED_CLASSES + 1) * n * hw,
        bytes_accessed=(x_rows.size * x_bytes + y_rows.size * 4
                        + n * n_par * t * 4
                        + (w_pad.size + b_pad.size) * 4),
    )

    partials = pl.pallas_call(
        kernel,
        out_shape=jax.ShapeDtypeStruct((n * n_par, 1, t), jnp.float32),
        grid_spec=pltpu.PrefetchScalarGridSpec(
            num_scalar_prefetch=0,
            grid=(n, n_par, n_seq),
            in_specs=[
                pl.BlockSpec((None, IN_CHANNELS, t),
                             lambda i, p, j: (i, 0, p * n_seq + j)),
                pl.BlockSpec((PADDED_CLASSES, IN_CHANNELS),
                             lambda i, p, j: (0, 0)),
                pl.BlockSpec((PADDED_CLASSES, 1), lambda i, p, j: (0, 0)),
                pl.BlockSpec((None, 1, t),
                             lambda i, p, j: (i, 0, p * n_seq + j)),
            ],
            out_specs=pl.BlockSpec((None, 1, t),
                                   lambda i, p, j: (i * n_par + p, 0, 0)),
        ),
        compiler_params=pltpu.CompilerParams(
            dimension_semantics=("parallel", "parallel", "arbitrary"),
            vmem_limit_bytes=vmem_limit),
        cost_estimate=cost,
    )(x_rows, w_pad, b_pad, y_rows)

    return jnp.sum(partials) / jnp.float32(total_rows)


def _reference_loss(x_nchw, y, weight, bias):
    """Pure-JAX reference of F.cross_entropy(Conv2d(256,21,1)(x), y)."""
    n, c, h, w = x_nchw.shape
    x_rows = jnp.transpose(x_nchw, (0, 2, 3, 1)).reshape(-1, c)
    w_mat = weight.reshape(NUM_CLASSES, IN_CHANNELS)
    logits = x_rows @ w_mat.T + bias
    logz = jax.nn.logsumexp(logits, axis=-1)
    tgt = jnp.take_along_axis(logits, y.reshape(-1, 1), axis=-1)[:, 0]
    return jnp.mean(logz - tgt)


if __name__ == "__main__":
    key = jax.random.PRNGKey(0)
    kx, ky, kw, kb = jax.random.split(key, 4)

    # Small shapes consistent with the module: Conv2d(256, 21, 1) forces C=256.
    N, H, W = 2, 16, 16
    x = jax.random.normal(kx, (N, IN_CHANNELS, H, W), jnp.float32)
    y = jax.random.randint(ky, (N, H, W), 0, NUM_CLASSES, jnp.int32)

    bound = 1.0 / np.sqrt(IN_CHANNELS)
    weight = jax.random.uniform(kw, (NUM_CLASSES, IN_CHANNELS, 1, 1),
                                jnp.float32, -bound, bound)
    bias = jax.random.uniform(kb, (NUM_CLASSES,), jnp.float32, -bound, bound)

    ref = jax.block_until_ready(_reference_loss(x, y, weight, bias))

    # 1) default config (single pixel tile at this small spatial size)
    loss = jax.block_until_ready(conv1x1_cross_entropy_loss(x, y, weight, bias))
    # 2) force multiple tiles -> exercises the 2-way parallel pixel split
    loss_split = jax.block_until_ready(
        conv1x1_cross_entropy_loss(x, y, weight, bias, tile_hw=128))
    for got, name in ((loss, "default"), (loss_split, "split")):
        if not np.allclose(np.asarray(got), np.asarray(ref), rtol=1e-4, atol=1e-4):
            raise AssertionError(f"[{name}] mismatch: pallas={got} ref={ref}")

    # 3) odd tile count with a partial last tile -> exercises the tail mask
    H2, W2 = 16, 20
    x2 = jax.random.normal(kx, (1, IN_CHANNELS, H2, W2), jnp.float32)
    y2 = jax.random.randint(ky, (1, H2, W2), 0, NUM_CLASSES, jnp.int32)
    ref2 = jax.block_until_ready(_reference_loss(x2, y2, weight, bias))
    loss2 = jax.block_until_ready(
        conv1x1_cross_entropy_loss(x2, y2, weight, bias, tile_hw=128))
    if not np.allclose(np.asarray(loss2), np.asarray(ref2), rtol=1e-4, atol=1e-4):
        raise AssertionError(f"[tail] mismatch: pallas={loss2} ref={ref2}")

    # 4) opt-in bf16 x/w (halved HBM traffic) -- looser tolerance vs f32 ref.
    loss_bf16 = jax.block_until_ready(
        conv1x1_cross_entropy_loss(x, y, weight, bias, cast_bf16=True))
    if not np.allclose(np.asarray(loss_bf16), np.asarray(ref), rtol=5e-2, atol=5e-2):
        raise AssertionError(f"[bf16] mismatch: pallas={loss_bf16} ref={ref}")

    print("KERNEL_OK")
</pallas_src>

<mosaic_0001>
module attributes {stable_mosaic.version = 11 : i64} {
  func.func @_ce_kernel(%arg0: i32, %arg1: i32, %arg2: i32, %arg3: memref<1x256x256xf32, #tpu.memory_space<vmem>>, %arg4: memref<32x256xf32, #tpu.memory_space<vmem>>, %arg5: memref<32x1xf32, #tpu.memory_space<vmem>>, %arg6: memref<1x1x256xi32, #tpu.memory_space<vmem>>, %arg7: memref<1x1x256xf32, #tpu.memory_space<vmem>>) attributes {dimension_semantics = [#tpu.dimension_semantics<parallel>, #tpu.dimension_semantics<parallel>, #tpu.dimension_semantics<arbitrary>], iteration_bounds = array<i64: 2, 1, 1>, scalar_prefetch = 0 : i64, scratch_operands = 0 : i64, tpu.core_type = #tpu.core_type<tc>, window_params = [{transform_indices = @transform_0, window_bounds = array<i64: 1, 256, 256>}, {pipeline_mode = #tpu.pipeline_mode<synchronous>, transform_indices = @transform_1, window_bounds = array<i64: 32, 256>}, {pipeline_mode = #tpu.pipeline_mode<synchronous>, transform_indices = @transform_2, window_bounds = array<i64: 32, 1>}, {transform_indices = @transform_3, window_bounds = array<i64: 1, 1, 256>}, {transform_indices = @transform_4, window_bounds = array<i64: 1, 1, 256>}]} {
    %c0_i32 = arith.constant 0 : i32
    %0 = arith.cmpi eq, %arg2, %c0_i32 : i32
    %1 = arith.extui %0 : i1 to i32
    %c0_i32_0 = arith.constant 0 : i32
    %2 = arith.cmpi ne, %1, %c0_i32_0 : i32
    scf.if %2 {
      %cst_20 = arith.constant 0.000000e+00 : f32
      %35 = vector.broadcast %cst_20 : f32 to vector<1x256xf32>
      %c0_21 = arith.constant 0 : index
      %c0_22 = arith.constant 0 : index
      %c0_23 = arith.constant 0 : index
      %36 = vector.load %arg7[%c0_21, %c0_22, %c0_23] : memref<1x1x256xf32, #tpu.memory_space<vmem>>, vector<1x1x256xf32>
      %37 = vector.shape_cast %36 : vector<1x1x256xf32> to vector<1x256xf32>
      %38 = vector.shape_cast %35 : vector<1x256xf32> to vector<1x1x256xf32>
      tpu.vector_store %arg7[%c0_21, %c0_22, %c0_23], %38 {strides = array<i32>} : memref<1x1x256xf32, #tpu.memory_space<vmem>>, vector<1x1x256xf32>,
    } else {
    }
    %c0 = arith.constant 0 : index
    %c0_1 = arith.constant 0 : index
    %c0_2 = arith.constant 0 : index
    %3 = vector.load %arg3[%c0, %c0_1, %c0_2] : memref<1x256x256xf32, #tpu.memory_space<vmem>>, vector<1x256x256xf32>
    %4 = vector.shape_cast %3 : vector<1x256x256xf32> to vector<256x256xf32>
    %c0_3 = arith.constant 0 : index
    %c0_4 = arith.constant 0 : index
    %5 = vector.load %arg4[%c0_3, %c0_4] : memref<32x256xf32, #tpu.memory_space<vmem>>, vector<32x256xf32>
    %cst = arith.constant dense<0.000000e+00> : vector<32x256xf32>
    %6 = tpu.matmul %5, %4, %cst {dimension_numbers = #tpu.dot_dimension_numbers<[1], [0], [0], [1], [0, 0, 1, 1], [], []>} : vector<32x256xf32>, vector<256x256xf32>, vector<32x256xf32> -> vector<32x256xf32>
    %c0_5 = arith.constant 0 : index
    %c0_6 = arith.constant 0 : index
    %7 = vector.load %arg5[%c0_5, %c0_6] : memref<32x1xf32, #tpu.memory_space<vmem>>, vector<32x1xf32>
    %8 = vector.broadcast %7 : vector<32x1xf32> to vector<32x256xf32>
    %9 = arith.addf %6, %8 : vector<32x256xf32>
    %cst_7 = arith.constant dense<0xFF800000> : vector<256xf32>
    %10 = vector.multi_reduction <maximumf>, %9, %cst_7 [0] : vector<32x256xf32> to vector<256xf32>
    %11 = vector.shape_cast %10 : vector<256xf32> to vector<1x256xf32>
    %12 = vector.broadcast %11 : vector<1x256xf32> to vector<32x256xf32>
    %13 = arith.subf %9, %12 : vector<32x256xf32>
    %14 = math.exp %13 : vector<32x256xf32>
    %cst_8 = arith.constant dense<0.000000e+00> : vector<256xf32>
    %15 = vector.multi_reduction <add>, %14, %cst_8 [0] : vector<32x256xf32> to vector<256xf32>
    %16 = vector.shape_cast %15 : vector<256xf32> to vector<1x256xf32>
    %c0_9 = arith.constant 0 : index
    %c0_10 = arith.constant 0 : index
    %c0_11 = arith.constant 0 : index
    %17 = vector.load %arg6[%c0_9, %c0_10, %c0_11] : memref<1x1x256xi32, #tpu.memory_space<vmem>>, vector<1x1x256xi32>
    %18 = vector.shape_cast %17 : vector<1x1x256xi32> to vector<1x256xi32>
    %19 = tpu.iota {dimensions = array<i32: 0>} : vector<32x1xi32>
    %20 = vector.broadcast %19 : vector<32x1xi32> to vector<32x256xi32>
    %21 = vector.broadcast %18 : vector<1x256xi32> to vector<32x256xi32>
    %22 = arith.cmpi eq, %20, %21 : vector<32x256xi32>
    %cst_12 = arith.constant 0.000000e+00 : f32
    %23 = vector.broadcast %cst_12 : f32 to vector<32x256xf32>
    %24 = arith.select %22, %13, %23 : vector<32x256xi1>, vector<32x256xf32>
    %cst_13 = arith.constant dense<0.000000e+00> : vector<256xf32>
    %25 = vector.multi_reduction <add>, %24, %cst_13 [0] : vector<32x256xf32> to vector<256xf32>
    %26 = vector.shape_cast %25 : vector<256xf32> to vector<1x256xf32>
    %27 = math.log %16 : vector<1x256xf32>
    %28 = arith.subf %27, %26 : vector<1x256xf32>
    %c0_14 = arith.constant 0 : index
    %c0_15 = arith.constant 0 : index
    %c0_16 = arith.constant 0 : index
    %29 = vector.load %arg7[%c0_14, %c0_15, %c0_16] : memref<1x1x256xf32, #tpu.memory_space<vmem>>, vector<1x1x256xf32>
    %30 = vector.shape_cast %29 : vector<1x1x256xf32> to vector<1x256xf32>
    %31 = arith.addf %30, %28 : vector<1x256xf32>
    %c0_17 = arith.constant 0 : index
    %c0_18 = arith.constant 0 : index
    %c0_19 = arith.constant 0 : index
    %32 = vector.load %arg7[%c0_17, %c0_18, %c0_19] : memref<1x1x256xf32, #tpu.memory_space<vmem>>, vector<1x1x256xf32>
    %33 = vector.shape_cast %32 : vector<1x1x256xf32> to vector<1x256xf32>
    %34 = vector.shape_cast %31 : vector<1x256xf32> to vector<1x1x256xf32>
    tpu.vector_store %arg7[%c0_17, %c0_18, %c0_19], %34 {strides = array<i32>} : memref<1x1x256xf32, #tpu.memory_space<vmem>>, vector<1x1x256xf32>,
    return
  }
  func.func @transform_0(%arg0: i32, %arg1: i32, %arg2: i32) -> (i32, i32, i32) {
    %c1_i32 = arith.constant 1 : i32
    %0 = arith.muli %arg1, %c1_i32 : i32
    %1 = arith.addi %0, %arg2 : i32
    %c0_i32 = arith.constant 0 : i32
    %c0_i32_0 = arith.constant 0 : i32
    return %arg0, %c0_i32, %1 : i32, i32, i32
  }
  func.func @transform_1(%arg0: i32, %arg1: i32, %arg2: i32) -> (i32, i32) {
    %c0_i32 = arith.constant 0 : i32
    %c0_i32_0 = arith.constant 0 : i32
    %c0_i32_1 = arith.constant 0 : i32
    return %c0_i32, %c0_i32_0 : i32, i32
  }
  func.func @transform_2(%arg0: i32, %arg1: i32, %arg2: i32) -> (i32, i32) {
    %c0_i32 = arith.constant 0 : i32
    %c0_i32_0 = arith.constant 0 : i32
    %c0_i32_1 = arith.constant 0 : i32
    return %c0_i32, %c0_i32_0 : i32, i32
  }
  func.func @transform_3(%arg0: i32, %arg1: i32, %arg2: i32) -> (i32, i32, i32) {
    %c1_i32 = arith.constant 1 : i32
    %0 = arith.muli %arg1, %c1_i32 : i32
    %1 = arith.addi %0, %arg2 : i32
    %c0_i32 = arith.constant 0 : i32
    %c0_i32_0 = arith.constant 0 : i32
    return %arg0, %c0_i32, %1 : i32, i32, i32
  }
  func.func @transform_4(%arg0: i32, %arg1: i32, %arg2: i32) -> (i32, i32, i32) {
    %c1_i32 = arith.constant 1 : i32
    %0 = arith.muli %arg0, %c1_i32 : i32
    %1 = arith.addi %0, %arg1 : i32
    %c0_i32 = arith.constant 0 : i32
    %c0_i32_0 = arith.constant 0 : i32
    %c0_i32_1 = arith.constant 0 : i32
    return %1, %c0_i32, %c0_i32_0 : i32, i32, i32
  }
}

</mosaic_0001>

<bundles_post_ra>
// kernel: tpu_custom_call.1
= control target key start
LH: loop header
LB: loop body
LE: loop exit
PB: predicated region body
PF: predicated region fallthrough
CT: control target
= control target key end

     0   :  { %s1337_s0 = inlined_call_operand.hbm [shape: f32[2,256,256], index: 0, kind: input, shape index: {}]   ;;  %s1338_s1 = inlined_call_operand.hbm [shape: f32[32,256], index: 1, kind: input, shape index: {}]   ;;  %s1339_s2 = inlined_call_operand.vmem [shape: f32[32,1], index: 2, kind: input, shape index: {}]   ;;  %s1340_s3 = inlined_call_operand.vmem [shape: s32[2,1,256], index: 3, kind: input, shape index: {}]   ;;  %s1341_s4 = inlined_call_operand.hbm [shape: f32[2,1,256], index: 4, kind: output, shape index: {}]  }
   0x1   :  { %1345 = sst [smem:[#allocation12_spill]] %s1338_s1 }
   0x2   :  { %9 = vsyncpa [#allocation3], 0 }
   0x3   :  { %11 = vsyncpa [#allocation3 + $0x1], 0 }
   0x4   :  { %12 = vsyncpa [#allocation6], 0 }
   0x5   :  { %13 = vsyncpa [#allocation4], 0 }
   0x6   :  { %15 = vsyncpa [#allocation4 + $0x1], 0  ;;  %s1071_s15 = smov 0   ;;  %s1073_s16 = smov 0  }
   0x7   :  { %s1075_s17 = smov 0   ;;  %s1077_s18 = smov 0  }
   0x8   :  { %s1079_s19 = smov 0   ;;  %s1081_s20 = smov 0  }
   0x9 LB: > { %s776_s21 = sadd.s32 4294967295, %s1039_s20   ;;  %s777_s22 = sadd.s32 4294967294, %s1039_s20   ;;  %s1039_s20 = sphi %s1081_s20, %s21_s20   ;;  %s1035_s19 = sphi %s1079_s19, %s1364_s19   ;;  %s1031_s18 = sphi %s1077_s18, %s1363_s18   ;;  %s1027_s17 = sphi %s1075_s17, %s1362_s17   ;;  %s1023_s16 = sphi %s1073_s16, %s1361_s16   ;;  %s1019_s15 = sphi %s1071_s15, %s1360_s15  }
   0xa   : > { %p64_p0 = scmp.ne.s32.totalorder %s1023_s16, %s1019_s15  ;;  %p1105_p1 = scmp.eq.s32.totalorder %s776_s21, 0 }
   0xb   : > { %p1109_p2 = scmp.eq.s32.totalorder %s776_s21, 1  ;;  %p168_p3 = scmp.eq.s32.totalorder %s777_s22, 1 }
   0xc   : > { %p1115_p4 = por %p1105_p1, %p64_p0  ;;  %p778_p5 = scmp.ge.s32.totalorder %s1039_s20, 1 }
   0xd   : > { %p1120_p6 = por %p168_p3, %p64_p0  ;;  %p175_p7 = scmp.lt.s32.totalorder %s1039_s20, 3 }
   0xe   : > { %s1350_s1 = sld [smem:[#allocation12_spill]]  ;;  %s1041_s5 = smov [#allocation5]  }
   0xf   : > { %p1128_p8 = pnand %p778_p5, %p175_p7  ;;  %s188_s6 = sshll.u32 %s1041_s5, 4  ;;  %s189_s6 = int_to_ptr.vmem [resolvable:$true] %s188_s6 }
  0x10   : > { %p780_p11 = scmp.ge.s32.totalorder %s1039_s20, 2  ;;  %s1342_s7 = smov 256  }
  0x11   : > { %p802_p9 = pneg %p1128_p8  ;;  %s1343_s8 = smov 16  }
  0x12   : > { %s40_s9 = sadd.s32 1, %s1035_s19  ;;  %s51_s10 = sadd.s32 1, %s1027_s17 }
  0x13   : > { %p803_p10 = pnand %p802_p9, %p1105_p1  ;;  %p42_p12 = scmp.ge.s32.totalorder %s40_s9, 2 }
  0x14   : > { %s186_s29 = sshll.u32 %s1350_s1, 4  ;;  %p58_p13 = scmp.ne.s32.totalorder %s1027_s17, %s1023_s16  ;;  %s187_s29 = int_to_ptr.hbm [resolvable:$true] %s186_s29 }
  0x15   : > { %805 = dma.hbm_to_vmem [thread:$0]  (!%p803_p10), %s187_s29, 1024, %s189_s6, [#allocation6], %s1342_s7, %s1342_s7, %s1343_s8  }
  0x16   : > { %p59_p0 = scmp.eq.s32.totalorder %s1039_s20, 0  ;;  %s1366_s9 = smov (%p42_p12, %s40_s9), 0 }
  0x17   : > { %1352 = sst [smem:[#allocation11_spill]] %s1366_s9  ;;  %p1153_p5 = por %p1109_p2, %p58_p13 }
  0x18   : > { %p1147_p3 = por %p59_p0, %p58_p13  ;;  %s46_s13 = ssub.s32 %s1035_s19, %s1366_s9 }
  0x19   : > { %p815_p7 = scmp.lt.s32.totalorder %s1039_s20, 2  ;;  %p49_p9 = scmp.eq.s32.totalorder %s46_s13, 0 }
  0x1a   : > { %s205_s14 = sand.u32 1, %s1027_s17   ;;  %s793_s27 = sshll.u32 %s1035_s19, 9 }
  0x1b   : > { %s781_s21 = sshll.u32 %s205_s14, 9  ;;  %s217_s5 = scalar_lea.hbm %s1337_s0, %s793_s27 }
  0x1c   : > { %s1162_s22 = scalar_select %p49_p9, %s1027_s17, %s51_s10  }
  0x1d   : > { %s209_s6 = scalar_lea.vmem [#allocation2], %s781_s21  ;;  %s218_s24 = sshll.u32 %s217_s5, 4  ;;  %s219_s24 = int_to_ptr.hbm [resolvable:$true] %s218_s24 }
  0x1e   : > { %s220_s7 = sshll.u32 %s209_s6, 4  ;;  %p807_p2 = pnand %p815_p7, %p1147_p3  ;;  %s221_s7 = int_to_ptr.vmem [resolvable:$true] %s220_s7 }
  0x1f   : > { %s206_s8 = scalar_lea.sflag [#allocation3], %s205_s14  ;;  %s1355_s1 = smov 16  }
  0x20   : > { %s1356_s9 = smov 256   ;;  %246 = sbr.rel (%p1128_p8) target bundleno = 298 (0x12a), region = 36 }
  0x21   : > { %809 = dma.hbm_to_vmem [thread:$0]  (!%p807_p2), %s219_s24, 8192, %s221_s7, %s206_s8, %s1356_s9, %s1356_s9, %s1355_s1  }
  0x22   : > { %s1176_s10 = sand.u32 (!%p1128_p8), 1, %s1023_s16  }
  0x23   : > { %s785_s13 = sshll.u32 (!%p1128_p8), %s1176_s10, 9  ;;  %s249_s21 = scalar_lea.sflag (!%p1128_p8), [#allocation3], %s1176_s10 }
  0x24   : > { %s1180_s27 = scalar_lea.vmem (!%p1128_p8), [#allocation2], %s785_s13 }
  0x25   : > { %1006 = dma.done.wait (%p1115_p4), %s249_s21, 8192  }
  0x26   : > { %1008 = vsyncadd (%p1115_p4), %s249_s21, 4294959104 }
  0x27   : > { %1010 = dma.done.wait (%p1105_p1), [#allocation6], 1024  }
  0x28   : > { %1012 = vsyncadd (%p1105_p1), [#allocation6], 4294966272  ;;  %v345_v0 = vld [vmem:[%s1180_s27 + $0xf0] sm:$0xff]  ;;  %v346_v1 = vld [vmem:[%s1180_s27 + $0xf8] sm:$0xff]  ;;  %p296_p1 = scmp.lt.s32.totalorder %s1031_s18, 1  ;;  %s787_s24 = sshll.u32 %s1176_s10, 1 }
  0x29   : > { %v343_v2 = vld [vmem:[%s1180_s27 + $0xe0] sm:$0xff]  ;;  %411 = vmatpush.msra.mxu0 %v345_v0  ;;  %469 = vmatpush.msra.mxu2 %v346_v1  ;;  %v377_v3 = vld [vmem:[%s1180_s27 + $0x1f0] sm:$0xff]  ;;  %v344_v4 = vld [vmem:[%s1180_s27 + $0xe8] sm:$0xff]  ;;  %s1285_s13 = scalar_lea.vmem [#allocation7], %s787_s24  ;;  %s790_s21 = sshll.u32 %s1031_s18, 1  ;;  %vm639_vm9 = vcmask 1040384  }
  0x2a   : > { %v378_v5 = vld [vmem:[%s1180_s27 + $0x1f8] sm:$0xff]  ;;  %440 = vmatpush.msra.mxu1 %v377_v3  ;;  %v341_v6 = vld [vmem:[%s1180_s27 + $0xd0] sm:$0xff]  ;;  %v375_v7 = vld [vmem:[%s1180_s27 + $0x1e0] sm:$0xff]  ;;  %s297_s14 = scalar_select %p296_p1, %s1031_s18, 1 }
  0x2b   : > { %498 = vmatpush.msra.mxu3 %v378_v5  ;;  %v342_v8 = vld [vmem:[%s1180_s27 + $0xd8] sm:$0xff]  ;;  %412 = vmatpush.msra.mxu0 %v343_v2  ;;  %v376_v9 = vld [vmem:[%s1180_s27 + $0x1e8] sm:$0xff]  ;;  %v373_v10 = vld [vmem:[%s1180_s27 + $0x1d0] sm:$0xff]  ;;  %s660_s23 = scalar_lea.hbm %s1341_s4, %s790_s21  ;;  %s662_s25 = sshll.u32 %s1285_s13, 4  ;;  %s663_s25 = int_to_ptr.vmem [resolvable:$true] %s662_s25 }
  0x2c   : > { %470 = vmatpush.msra.mxu2 %v344_v4  ;;  %441 = vmatpush.msra.mxu1 %v375_v7  ;;  %v339_v11 = vld [vmem:[%s1180_s27 + $0xc0] sm:$0xff]  ;;  %v340_v12 = vld [vmem:[%s1180_s27 + $0xc8] sm:$0xff]  ;;  %v374_v13 = vld [vmem:[%s1180_s27 + $0x1d8] sm:$0xff]  ;;  %v1044_v4 = vmov 0   ;;  %s788_s28 = sshll.u32 %s297_s14, 1  ;;  %s664_s30 = sshll.u32 %s660_s23, 4  ;;  %s665_s30 = int_to_ptr.hbm [resolvable:$true] %s664_s30 }
  0x2d   : > { %499 = vmatpush.msra.mxu3 %v376_v9  ;;  %413 = vmatpush.msra.mxu0 %v341_v6  ;;  %v371_v14 = vld [vmem:[%s1180_s27 + $0x1c0] sm:$0xff]  ;;  %v372_v15 = vld [vmem:[%s1180_s27 + $0x1c8] sm:$0xff]  ;;  %v337_v16 = vld [vmem:[%s1180_s27 + $0xb0] sm:$0xff]  ;;  %s302_s6 = scalar_lea.vmem %s1340_s3, %s788_s28  ;;  %s649_s18 = scalar_lea.sflag [#allocation4], %s1176_s10 }
  0x2e   : > { %471 = vmatpush.msra.mxu2 %v342_v8  ;;  %442 = vmatpush.msra.mxu1 %v373_v10  ;;  %v338_v17 = vld [vmem:[%s1180_s27 + $0xb8] sm:$0xff]  ;;  %v369_v18 = vld [vmem:[%s1180_s27 + $0x1b0] sm:$0xff]  ;;  %v335_v20 = vld [vmem:[%s1180_s27 + $0xa0] sm:$0xff]  ;;  %s967_s7 = sshra.s32 %s665_s30, 4  ;;  %s973_s14 = scalar_lea.hbm %s1341_s4, 4  ;;  %s968_s7 = int_to_ptr.hbm [resolvable:$true] %s967_s7 }
  0x2f   : > { %500 = vmatpush.msra.mxu3 %v374_v13  ;;  %414 = vmatpush.msra.mxu0 %v339_v11  ;;  %v370_v19 = vld [vmem:[%s1180_s27 + $0x1b8] sm:$0xff]  ;;  %v336_v21 = vld [vmem:[%s1180_s27 + $0xa8] sm:$0xff]  ;;  %v367_v22 = vld [vmem:[%s1180_s27 + $0x1a0] sm:$0xff]  ;;  %s969_s8 = scalar_lea.hbm %s968_s7, 2  ;;  %p974_p12 = scmp.lt.s32.totalorder %s968_s7, %s1341_s4 }
  0x30   : > { %472 = vmatpush.msra.mxu2 %v340_v12  ;;  %443 = vmatpush.msra.mxu1 %v371_v14  ;;  %v368_v23 = vld [vmem:[%s1180_s27 + $0x1a8] sm:$0xff]  ;;  %v333_v24 = vld [vmem:[%s1180_s27 + $0x90] sm:$0xff]  ;;  %v334_v25 = vld [vmem:[%s1180_s27 + $0x98] sm:$0xff]  ;;  %p970_p4 = scmp.ne.s32.totalorder %s968_s7, %s969_s8  ;;  %p975_p13 = scmp.lt.s32.totalorder %s973_s14, %s969_s8 }
  0x31   : > { %501 = vmatpush.msra.mxu3 %v372_v15  ;;  %415 = vmatpush.msra.mxu0 %v337_v16  ;;  %v365_v26 = vld [vmem:[%s1180_s27 + $0x190] sm:$0xff]  ;;  %v366_v27 = vld [vmem:[%s1180_s27 + $0x198] sm:$0xff]  ;;  %v331_v28 = vld [vmem:[%s1180_s27 + $0x80] sm:$0xff] }
  0x32   : > { %473 = vmatpush.msra.mxu2 %v338_v17  ;;  %444 = vmatpush.msra.mxu1 %v369_v18  ;;  %v332_v29 = vld [vmem:[%s1180_s27 + $0x88] sm:$0xff]  ;;  %v363_v30 = vld [vmem:[%s1180_s27 + $0x180] sm:$0xff]  ;;  %v329_v32 = vld [vmem:[%s1180_s27 + $0x70] sm:$0xff]  ;;  %p971_p8 = pnand %p970_p4, %p1153_p5  ;;  %p976_p0 = por %p975_p13, %p974_p12 }
  0x33   : > { %502 = vmatpush.msra.mxu3 %v370_v19  ;;  %416 = vmatpush.msra.mxu0 %v335_v20  ;;  %v364_v31 = vld [vmem:[%s1180_s27 + $0x188] sm:$0xff]  ;;  %v330_v33 = vld [vmem:[%s1180_s27 + $0x78] sm:$0xff]  ;;  %v361_v34 = vld [vmem:[%s1180_s27 + $0x170] sm:$0xff] }
  0x34   : > { %474 = vmatpush.msra.mxu2 %v336_v21  ;;  %445 = vmatpush.msra.mxu1 %v367_v22  ;;  %v362_v35 = vld [vmem:[%s1180_s27 + $0x178] sm:$0xff]  ;;  %v327_v36 = vld [vmem:[%s1180_s27 + $0x60] sm:$0xff]  ;;  %v328_v37 = vld [vmem:[%s1180_s27 + $0x68] sm:$0xff]  ;;  %p972_p10 = pneg %p971_p8 }
  0x35   : > { %503 = vmatpush.msra.mxu3 %v368_v23  ;;  %417 = vmatpush.msra.mxu0 %v333_v24  ;;  %v359_v38 = vld [vmem:[%s1180_s27 + $0x160] sm:$0xff]  ;;  %v360_v39 = vld [vmem:[%s1180_s27 + $0x168] sm:$0xff]  ;;  %v325_v40 = vld [vmem:[%s1180_s27 + $0x50] sm:$0xff] }
  0x36   : > { %475 = vmatpush.msra.mxu2 %v334_v25  ;;  %446 = vmatpush.msra.mxu1 %v365_v26  ;;  %v326_v41 = vld [vmem:[%s1180_s27 + $0x58] sm:$0xff]  ;;  %v357_v42 = vld [vmem:[%s1180_s27 + $0x150] sm:$0xff]  ;;  %v323_v44 = vld [vmem:[%s1180_s27 + $0x40] sm:$0xff]  ;;  %p977_p3 = pnand %p976_p0, %p972_p10 }
  0x37   : > { %504 = vmatpush.msra.mxu3 %v366_v27  ;;  %418 = vmatpush.msra.mxu0 %v331_v28  ;;  %v358_v43 = vld [vmem:[%s1180_s27 + $0x158] sm:$0xff]  ;;  %v324_v45 = vld [vmem:[%s1180_s27 + $0x48] sm:$0xff]  ;;  %v355_v46 = vld [vmem:[%s1180_s27 + $0x140] sm:$0xff] }
  0x38   : > { %476 = vmatpush.msra.mxu2 %v332_v29  ;;  %447 = vmatpush.msra.mxu1 %v363_v30  ;;  %v356_v47 = vld [vmem:[%s1180_s27 + $0x148] sm:$0xff]  ;;  %v321_v48 = vld [vmem:[%s1180_s27 + $0x30] sm:$0xff]  ;;  %v322_v49 = vld [vmem:[%s1180_s27 + $0x38] sm:$0xff] }
  0x39   : > { %505 = vmatpush.msra.mxu3 %v364_v31  ;;  %419 = vmatpush.msra.mxu0 %v329_v32  ;;  %v353_v50 = vld [vmem:[%s1180_s27 + $0x130] sm:$0xff]  ;;  %v354_v51 = vld [vmem:[%s1180_s27 + $0x138] sm:$0xff]  ;;  %v319_v52 = vld [vmem:[%s1180_s27 + $0x20] sm:$0xff] }
  0x3a   : > { %477 = vmatpush.msra.mxu2 %v330_v33  ;;  %448 = vmatpush.msra.mxu1 %v361_v34  ;;  %v320_v53 = vld [vmem:[%s1180_s27 + $0x28] sm:$0xff]  ;;  %v351_v54 = vld [vmem:[%s1180_s27 + $0x120] sm:$0xff]  ;;  %v317_v56 = vld [vmem:[%s1180_s27 + $0x10] sm:$0xff] }
  0x3b   : > { %506 = vmatpush.msra.mxu3 %v362_v35  ;;  %420 = vmatpush.msra.mxu0 %v327_v36  ;;  %v352_v55 = vld [vmem:[%s1180_s27 + $0x128] sm:$0xff]  ;;  %v318_v57 = vld [vmem:[%s1180_s27 + $0x18] sm:$0xff]  ;;  %v349_v58 = vld [vmem:[%s1180_s27 + $0x110] sm:$0xff] }
  0x3c   : > { %478 = vmatpush.msra.mxu2 %v328_v37  ;;  %449 = vmatpush.msra.mxu1 %v359_v38  ;;  %v350_v59 = vld [vmem:[%s1180_s27 + $0x118] sm:$0xff]  ;;  %v315_v60 = vld [vmem:[%s1180_s27] sm:$0xff]  ;;  %v316_v61 = vld [vmem:[%s1180_s27 + $0x8] sm:$0xff] }
  0x3d   : > { %507 = vmatpush.msra.mxu3 %v360_v39  ;;  %421 = vmatpush.msra.mxu0 %v325_v40  ;;  %v379_v62 = vld [vmem:[#allocation5] sm:$0xff]  ;;  %v348_v0 = vld [vmem:[%s1180_s27 + $0x108] sm:$0xff]  ;;  %v389_v3 = vld [vmem:[%s1339_s2 + $0x10] sm:$0xff] }
  0x3e   : > { %479 = vmatpush.msra.mxu2 %v326_v41  ;;  %450 = vmatpush.msra.mxu1 %v357_v42  ;;  %v347_v63 = vld [vmem:[%s1180_s27 + $0x100] sm:$0xff]  ;;  %v380_v1 = vld [vmem:[#allocation5 + $0x8] sm:$0xff]  ;;  %v381_v5 = vld [vmem:[#allocation5 + $0x10] sm:$0xff] }
  0x3f   : > { %508 = vmatpush.msra.mxu3 %v358_v43  ;;  %422 = vmatpush.msra.mxu0 %v323_v44  ;;  %v387_v2 = vld [vmem:[%s1339_s2] sm:$0xff]  ;;  %v382_v6 = vld [vmem:[#allocation5 + $0x18] sm:$0xff]  ;;  %v388_v7 = vld [vmem:[%s1339_s2 + $0x8] sm:$0xff] }
  0x40   : > { %480 = vmatpush.msra.mxu2 %v324_v45  ;;  %451 = vmatpush.msra.mxu1 %v355_v46  ;;  %v390_v8 = vld [vmem:[%s1339_s2 + $0x18] sm:$0xff]  ;;  %v383_v9 = vld [vmem:[#allocation5 + $0x20] sm:$0xff]  ;;  %v384_v10 = vld [vmem:[#allocation5 + $0x28] sm:$0xff] }
  0x41   : > { %509 = vmatpush.msra.mxu3 %v356_v47  ;;  %423 = vmatpush.msra.mxu0 %v321_v48  ;;  %v385_v11 = vld [vmem:[#allocation5 + $0x30] sm:$0xff]  ;;  %v386_v12 = vld [vmem:[#allocation5 + $0x38] sm:$0xff] }
  0x42   : > { %481 = vmatpush.msra.mxu2 %v322_v49  ;;  %452 = vmatpush.msra.mxu1 %v353_v50 }
  0x43   : > { %510 = vmatpush.msra.mxu3 %v354_v51  ;;  %424 = vmatpush.msra.mxu0 %v319_v52 }
  0x44   : > { %482 = vmatpush.msra.mxu2 %v320_v53  ;;  %453 = vmatpush.msra.mxu1 %v351_v54 }
  0x45   : > { %511 = vmatpush.msra.mxu3 %v352_v55  ;;  %425 = vmatpush.msra.mxu0 %v317_v56 }
  0x46   : > { %483 = vmatpush.msra.mxu2 %v318_v57  ;;  %454 = vmatpush.msra.mxu1 %v349_v58 }
  0x47   : > { %512 = vmatpush.msra.mxu3 %v350_v59  ;;  %426 = vmatpush.msra.mxu0 %v315_v60 }
  0x48   : > { %484 = vmatpush.msra.mxu2 %v316_v61  ;;  %427 = vmatmul.f32.vlgmr.msra.gmra.mxu0 %v379_v62 }
  0x49   : > { %485 = vmatmul.f32.vlgmr.msra.gmra.mxu2 %v379_v62  ;;  %455 = vmatpush.msra.mxu1 %v347_v63  ;;  %v310_v62 = vlaneseq }
  0x4a   : > { %513 = vmatpush.msra.mxu3 %v348_v0  ;;  %456 = vmatmul.f32.vlgmr.msra.gmra.mxu1 %v380_v1 }
  0x4b   : > { %514 = vmatmul.f32.vlgmr.msra.gmra.mxu3 %v380_v1  ;;  %871 = vset.pattern.permute.xlu0 %v1044_v4  ;;  %vm1281_vm5 = vcmp.lt.s32.totalorder %v310_v62, 256 }
  0x4c   : > { %872 = vset.pattern.permute.xlu1 %v1044_v4  ;;  %393 = vperm.xlu0 %871, %v387_v2   ;;  %v587_v4 = vld [vmem:[%s302_s6] sm:$0x3] }
  0x4d   : > { %403 = vperm.xlu1 %872, %v389_v3  }
  0x50   : > { %430 = vmatmul.f32.gmra.mxu0 %v381_v5 }
  0x51   : > { %488 = vmatmul.f32.gmra.mxu2 %v381_v5 }
  0x52   : > { %459 = vmatmul.f32.gmra.mxu1 %v382_v6 }
  0x53   : > { %517 = vmatmul.f32.gmra.mxu3 %v382_v6  ;;  %v589_v6 = vshrl.u32 %v310_v62, 7 }
  0x54   : > { %398 = vperm.xlu0 %871, %v388_v7  }
  0x55   : > { %408 = vperm.xlu1 %872, %v390_v8  }
  0x58   : > { %433 = vmatmul.f32.gmra.mxu0 %v383_v9 }
  0x59   : > { %491 = vmatmul.f32.gmra.mxu2 %v383_v9 }
  0x5a   : > { %462 = vmatmul.f32.gmra.mxu1 %v384_v10 }
  0x5b   : > { %520 = vmatmul.f32.gmra.mxu3 %v384_v10 }
  0x60   : > { %436 = vmatmul.f32.gmra.mxu0 %v385_v11 }
  0x61   : > { %494 = vmatmul.f32.gmra.mxu2 %v385_v11  ;;  %v1273_v11 = vperm.slane %v587_v4, 0 }
  0x62   : > { %465 = vmatmul.f32.gmra.mxu1 %v386_v12 }
  0x63   : > { %523 = vmatmul.f32.gmra.mxu3 %v386_v12  ;;  %v594_v12 = vperm.slane %v587_v4, 1  ;;  %vm595_vm0 = vcmp.eq.s32.totalorder %v589_v6, %v1273_v11 }
  0x65   : > { %vm596_vm1 = vcmp.eq.s32.totalorder %v589_v6, %v594_v12 }
  0xbe   : > { %v394_v19 = vpop.permute.xlu0 %393 }
  0xbf   : > { %v404_v20 = vpop.permute.xlu1 %403 }
  0xc5   : > { %v428_v13 = vpop.f32.mrf.mxu0 }
  0xc6   : > { %v399_v26 = vpop.permute.xlu0 %398  ;;  %v429_v28 = vadd.f32 %v428_v13, %v394_v19 }
  0xc7   : > { %v457_v14 = vpop.f32.mrf.mxu1  ;;  %v409_v30 = vpop.permute.xlu1 %408 }
  0xc8   : > { %v458_v36 = vadd.f32 %v457_v14, %v429_v28 }
  0xcc   : > { %v486_v15 = vpop.f32.mrf.mxu2 }
  0xcd   : > { %v431_v16 = vpop.f32.mrf.mxu0  ;;  %v487_v40 = vadd.f32 %v486_v15, %v394_v19  ;;  %v590_v15 = vadd.s32 8, %v589_v6 }
  0xce   : > { %v515_v17 = vpop.f32.mrf.mxu3  ;;  %v432_v29 = vadd.f32 %v431_v16, %v399_v26 }
  0xcf   : > { %v460_v18 = vpop.f32.mrf.mxu1  ;;  %v516_v49 = vadd.f32 %v515_v17, %v487_v40  ;;  %vm598_vm2 = vcmp.eq.s32.totalorder %v590_v15, %v594_v12  ;;  %vm597_vm3 = vcmp.eq.s32.totalorder %v590_v15, %v1273_v11 }
  0xd0   : > { %v461_v37 = vadd.f32 %v460_v18, %v432_v29 }
  0xd4   : > { %v489_v21 = vpop.f32.mrf.mxu2 }
  0xd5   : > { %v434_v22 = vpop.f32.mrf.mxu0  ;;  %v490_v41 = vadd.f32 %v489_v21, %v399_v26 }
  0xd6   : > { %v518_v23 = vpop.f32.mrf.mxu3  ;;  %v435_v25 = vadd.f32 %v434_v22, %v404_v20 }
  0xd7   : > { %v463_v24 = vpop.f32.mrf.mxu1  ;;  %v519_v50 = vadd.f32 %v518_v23, %v490_v41 }
  0xd8   : > { %v464_v33 = vadd.f32 %v463_v24, %v435_v25 }
  0xda   : > { %v527_v42 = vmax.f32 %v458_v36, %v464_v33 }
  0xdc   : > { %v492_v27 = vpop.f32.mrf.mxu2 }
  0xdd   : > { %v437_v31 = vpop.f32.mrf.mxu0  ;;  %v493_v38 = vadd.f32 %v492_v27, %v404_v20  ;;  %v591_v20 = vadd.s32 16, %v589_v6 }
  0xde   : > { %v521_v32 = vpop.f32.mrf.mxu3  ;;  %v438_v34 = vadd.f32 %v437_v31, %v409_v30 }
  0xdf   : > { %v466_v35 = vpop.f32.mrf.mxu1  ;;  %v522_v45 = vadd.f32 %v521_v32, %v493_v38  ;;  %vm600_vm4 = vcmp.eq.s32.totalorder %v591_v20, %v594_v12  ;;  %vm599_vm6 = vcmp.eq.s32.totalorder %v591_v20, %v1273_v11 }
  0xe0   : > { %v467_v39 = vadd.f32 %v466_v35, %v438_v34 }
  0xe1   : > { %v536_v53 = vmax.f32 %v516_v49, %v522_v45 }
  0xe2   : > { %v528_v43 = vmax.f32 %v461_v37, %v467_v39 }
  0xe4   : > { %v495_v44 = vpop.f32.mrf.mxu2  ;;  %v529_v46 = vmax.f32 %v527_v42, %v528_v43 }
  0xe5   : > { %v496_v47 = vadd.f32 %v495_v44, %v409_v30 }
  0xe6   : > { %v524_v48 = vpop.f32.mrf.mxu3  ;;  %v530_v51 = vrot.slane %v529_v46, 4 }
  0xe7   : > { %v525_v52 = vadd.f32 %v524_v48, %v496_v47 }
  0xe8   : > { %v531_v54 = vmax.f32 %v529_v46, %v530_v51 }
  0xe9   : > { %v537_v55 = vmax.f32 %v519_v50, %v525_v52 }
  0xea   : > { %v532_v56 = vrot.slane %v531_v54, 2 }
  0xeb   : > { %v538_v57 = vmax.f32 %v536_v53, %v537_v55 }
  0xec   : > { %v533_v58 = vmax.f32 %v531_v54, %v532_v56 }
  0xed   : > { %v539_v59 = vrot.slane %v538_v57, 4 }
  0xee   : > { %v534_v60 = vrot.slane %v533_v58, 1 }
  0xef   : > { %v540_v61 = vmax.f32 %v538_v57, %v539_v59 }
  0xf0   : > { %v535_v63 = vmax.f32 %v533_v58, %v534_v60 }
  0xf1   : > { %v541_v0 = vrot.slane %v540_v61, 2 }
  0xf2   : > { %v545_v1 = vsub.f32 %v458_v36, %v535_v63  ;;  %v547_v2 = vsub.f32 %v461_v37, %v535_v63  ;;  %v549_v3 = vsub.f32 %v464_v33, %v535_v63  ;;  %v1271_v5 = vsub.f32 %v467_v39, %v535_v63 }
  0xf3   : > { %v542_v7 = vmax.f32 %v540_v61, %v541_v0  ;;  %v1045_v37 = vmov 0.0   ;;  %v592_v39 = vadd.s32 24, %v589_v6 }
  0xf4   : > { %v553_v8 = vmul.f32 1.442695, %v545_v1  ;;  %v557_v9 = vmul.f32 1.442695, %v547_v2  ;;  %v561_v10 = vmul.f32 1.442695, %v549_v3 }
  0xf5   : > { %v543_v13 = vrot.slane %v542_v7, 1  ;;  %v565_v14 = vmul.f32 1.442695, %v1271_v5  ;;  %v603_v27 = vsel %vm595_vm0, %v545_v1, 0.0  ;;  %v605_v31 = vsel %vm597_vm3, %v547_v2, 0.0 }
  0xf6   : > { %873 = vpow2.f32 %v553_v8  ;;  %314 = vst.msk [vmem:[%s1285_s13] sm:$0x3] %vm1281_vm5, %v1045_v37  ;;  %v611_v40 = vadd.f32 %v605_v31, %v603_v27  ;;  %vm602_vm7 = vcmp.eq.s32.totalorder %v592_v39, %v594_v12  ;;  %v607_v46 = vsel %vm599_vm6, %v549_v3, 0.0 }
  0xf7   : > { %875 = vpow2.f32 %v557_v9  ;;  %v544_v16 = vmax.f32 %v542_v7, %v543_v13  ;;  %vm601_vm8 = vcmp.eq.s32.totalorder %v592_v39, %v1273_v11 }
  0xf8   : > { %877 = vpow2.f32 %v561_v10  ;;  %v612_v48 = vadd.f32 %v611_v40, %v607_v46  ;;  %v609_v55 = vsel %vm601_vm8, %v1271_v5, 0.0 }
  0xf9   : > { %v546_v17 = vsub.f32 %v516_v49, %v544_v16  ;;  %v548_v18 = vsub.f32 %v519_v50, %v544_v16  ;;  %v550_v19 = vsub.f32 %v522_v45, %v544_v16  ;;  %879 = vpow2.f32 %v565_v14 }
  0xfa   : > { %v552_v21 = vsub.f32 %v525_v52, %v544_v16  ;;  %v613_v58 = vadd.f32 %v612_v48, %v609_v55 }
  0xfb   : > { %v555_v23 = vmul.f32 1.442695, %v546_v17  ;;  %v559_v24 = vmul.f32 1.442695, %v548_v18  ;;  %v604_v25 = vsel %vm596_vm1, %v546_v17, 0.0  ;;  %v606_v29 = vsel %vm598_vm2, %v548_v18, 0.0 }
  0xfc   : > { %v874_v22 = vpop.eup %873  ;;  %v563_v28 = vmul.f32 1.442695, %v550_v19  ;;  %v567_v32 = vmul.f32 1.442695, %v552_v21  ;;  %v620_v34 = vadd.f32 %v606_v29, %v604_v25  ;;  %v608_v42 = vsel %vm600_vm4, %v550_v19, 0.0 }
  0xfd   : > { %v876_v26 = vpop.eup %875  ;;  %881 = vpow2.f32 %v555_v23  ;;  %v610_v51 = vsel %vm602_vm7, %v552_v21, 0.0  ;;  %v614_v63 = vrot.slane %v613_v58, 4 }
  0xfe   : > { %v569_v30 = vadd.f32 %v876_v26, %v874_v22  ;;  %v878_v33 = vpop.eup %877  ;;  %883 = vpow2.f32 %v559_v24  ;;  %v621_v43 = vadd.f32 %v620_v34, %v608_v42  ;;  %v635_v24 = vld [vmem:[%s1285_s13] sm:$0x3] }
  0xff   : > { %v880_v38 = vpop.eup %879  ;;  %885 = vpow2.f32 %v563_v28  ;;  %v615_v4 = vadd.f32 %v614_v63, %v613_v58 }
 0x100   : > { %v570_v36 = vadd.f32 %v878_v33, %v569_v30  ;;  %887 = vpow2.f32 %v567_v32  ;;  %v622_v53 = vadd.f32 %v621_v43, %v610_v51 }
 0x101   : > { %v616_v10 = vrot.slane %v615_v4, 2 }
 0x102   : > { %v571_v41 = vadd.f32 %v880_v38, %v570_v36  ;;  %v623_v61 = vrot.slane %v622_v53, 4 }
 0x103   : > { %v882_v44 = vpop.eup %881  ;;  %v617_v12 = vadd.f32 %v616_v10, %v615_v4 }
 0x104   : > { %v572_v45 = vrot.slane %v571_v41, 4  ;;  %v884_v47 = vpop.eup %883  ;;  %v624_v2 = vadd.f32 %v623_v61, %v622_v53 }
 0x105   : > { %v578_v50 = vadd.f32 %v884_v47, %v882_v44  ;;  %v886_v52 = vpop.eup %885  ;;  %v618_v15 = vrot.slane %v617_v12, 1 }
 0x106   : > { %v573_v49 = vadd.f32 %v572_v45, %v571_v41  ;;  %v888_v57 = vpop.eup %887  ;;  %v625_v8 = vrot.slane %v624_v2, 2 }
 0x107   : > { %v579_v56 = vadd.f32 %v886_v52, %v578_v50  ;;  %v619_v20 = vadd.f32 %v618_v15, %v617_v12 }
 0x108   : > { %v574_v54 = vrot.slane %v573_v49, 2  ;;  %v626_v11 = vadd.f32 %v625_v8, %v624_v2 }
 0x109   : > { %v580_v60 = vadd.f32 %v888_v57, %v579_v56 }
 0x10a   : > { %v575_v59 = vadd.f32 %v574_v54, %v573_v49  ;;  %v627_v13 = vrot.slane %v626_v11, 1 }
 0x10b   : > { %v581_v62 = vrot.slane %v580_v60, 4 }
 0x10c   : > { %v576_v0 = vrot.slane %v575_v59, 1  ;;  %v628_v18 = vadd.f32 %v627_v13, %v626_v11 }
 0x10d   : > { %v582_v1 = vadd.f32 %v581_v62, %v580_v60 }
 0x10e   : > { %v577_v6 = vadd.f32 %v576_v0, %v575_v59 }
 0x10f   : > { %v583_v3 = vrot.slane %v582_v1, 2 }
 0x110   : > { %889 = vlog2.f32 %v577_v6 }
 0x111   : > { %v584_v7 = vadd.f32 %v583_v3, %v582_v1 }
 0x113   : > { %v585_v9 = vrot.slane %v584_v7, 1 }
 0x115   : > { %v586_v5 = vadd.f32 %v585_v9, %v584_v7 }
 0x116   : > { %v890_v14 = vpop.eup %889 }
 0x117   : > { %891 = vlog2.f32 %v586_v5  ;;  %v630_v17 = vmul.f32 0.6931472, %v890_v14 }
 0x119   : > { %v633_v22 = vsub.f32 %v630_v17, %v619_v20 }
 0x11d   : > { %v892_v16 = vpop.eup %891 }
 0x11e   : > { %v632_v19 = vmul.f32 0.6931472, %v892_v16 }
 0x120   : > { %v634_v21 = vsub.f32 %v632_v19, %v628_v18 }
 0x122   : > { %v638_v23 = vrot.slane %v634_v21, 7 }
 0x124   : > { %v640_v25 = vsel %vm639_vm9, %v633_v22, %v638_v23 }
 0x125   : > { %v642_v26 = vadd.f32 %v640_v25, %v635_v24 }
 0x127   : > { %647 = vst.msk [vmem:[%s1285_s13] sm:$0x3] %vm1281_vm5, %v642_v26 }
 0x128   : > { %980 = shalt.err (!%p977_p3)
}
 0x129   : > { %800 = dma.vmem_to_hbm [thread:$0]  (%p1153_p5), %s663_s25, 32, %s665_s30, %s649_s18  }
 0x12a PF: > { %s676_s10 = sand.u32 1, %s1019_s15   ;;  %p811_p7 = pnand %p780_p11, %p1120_p6 }
 0x12b   : > { %s677_s5 = scalar_lea.sflag [#allocation4], %s676_s10 }
 0x12c   : > { %p812_p9 = pneg %p811_p7 }
 0x12e   : > { %1014 = dma.done.wait (%p812_p9), %s677_s5, 32  }
 0x12f   : > { %1016 = vsyncadd (%p812_p9), %s677_s5, 4294967264  ;;  %s21_s20 = sadd.s32 1, %s1039_s20   ;;  %s1359_s12 = sld [smem:[#allocation11_spill]] }
 0x130   : > { %p18_p2 = scmp.ge.s32.totalorder %s21_s20, 4   ;;  %s1360_s15 = smov %s1023_s16 }
 0x131   : > { %s1361_s16 = smov %s1027_s17  ;;  %s1362_s17 = smov %s1162_s22 }
 0x132   : > { %s1363_s18 = smov %s1035_s19  ;;  %20 = sbr.rel (!%p18_p2) target bundleno = 9 (0x9), region = 92 }
 0x135   : > { %s1364_s19 = smov %s1359_s12 }
 0x137   :  { %683 = vsyncpa [#allocation3], 1 }
 0x138   :  { %685 = vsyncpa [#allocation3 + $0x1], 1 }
 0x139   :  { %686 = vsyncpa [#allocation6], 1 }
 0x13a   :  { %687 = vsyncpa [#allocation4], 1 }
 0x13b   :  { %689 = vsyncpa [#allocation4 + $0x1], 1 }

</bundles_post_ra>
